<compile_context>
chip_gen: v7x
topology: tpu7x:2x2x1
jax: 0.10.0
libtpu: 0.0.40
codegen_flags: <defaults>
</compile_context>

<pallas_src>
import functools

import jax
import jax.numpy as jnp
from jax import lax
from jax.experimental import pallas as pl
from jax.experimental.pallas import tpu as pltpu


def _pair(v):
    if isinstance(v, (tuple, list)):
        return (int(v[0]), int(v[1]))
    return (int(v), int(v))


def _round_up(n, m):
    return ((n + m - 1) // m) * m


def _divisors_desc(n):
    return [d for d in range(n, 0, -1) if n % d == 0]


def _choose_tiles(NC_pad, Ho, Hp, Wp, Wo, sH, bytes_in, bytes_out, h_blocked):
    """Pick the largest (NC_TILE, Ho_TILE) whose double-buffered footprint fits
    the budget, preferring >=2 total grid steps (v7x megacore / pipelining)."""
    BUDGET = 24 * 1024 * 1024  # safe for v5e/v6e (128 MiB) and v7x (64 MiB) VMEM

    def footprint(nc_t, ho_t):
        rows_in = ho_t * sH if h_blocked else Hp
        return (2 * rows_in * Wp * nc_t * bytes_in      # double-buffered input
                + 2 * ho_t * Wo * nc_t * bytes_out)     # double-buffered output

    nc_opts = [128 * d for d in _divisors_desc(NC_pad // 128)]
    ho_opts = _divisors_desc(Ho)
    cands = [(nc_t, ho_t) for nc_t in nc_opts for ho_t in ho_opts
             if footprint(nc_t, ho_t) <= BUDGET]
    if not cands:
        nc_t, ho_t = 128, 1   # TODO(synk): halo-blocked input DMA for huge H*W
    else:
        def score(c):
            steps = (NC_pad // c[0]) * (Ho // c[1])
            return (steps >= 2, c[0], c[1])
        nc_t, ho_t = max(cands, key=score)
    return nc_t, ho_t, footprint(nc_t, ho_t)


def _pool_kernel(x_ref, o_ref, *, pool_type, kH, kW, sH, sW, Ho_T, Wo,
                 h_blocked, acc_dtype, inv_area):
    """x_ref: (rows_in, Wp, NC_TILE) pre-padded input tile.
       o_ref: (Ho_T, Wo, NC_TILE) pooled output tile (single store)."""
    if h_blocked:
        h_base = 0
    else:
        # Full-H input slab; this output tile starts at row ho0 * sH.
        h_base = pl.multiple_of(pl.program_id(1) * (Ho_T * sH), Ho_T * sH)

    acc = None
    for dh in range(kH):
        for dw in range(kW):
            h_start = dh if h_blocked else h_base + dh
            h_idx = (pl.ds(h_start, Ho_T, stride=sH) if sH > 1
                     else pl.ds(h_start, Ho_T))
            w_idx = (pl.ds(dw, Wo, stride=sW) if sW > 1
                     else pl.ds(dw, Wo))
            slab = x_ref[h_idx, w_idx, :].astype(acc_dtype)
            if acc is None:
                acc = slab                       # no init pass needed
            elif pool_type == "max":
                acc = jnp.maximum(acc, slab)     # in-vreg functional chain
            else:
                acc = acc + slab
    if pool_type == "avg":
        acc = acc * jnp.asarray(inv_area, dtype=acc.dtype)
    o_ref[...] = acc.astype(o_ref.dtype)         # single lane-dense store


def pool2d(x, *, type, kernel_size, padding, stride):
    """Pallas equivalent of WrapPool2d(type, kernel_size, padding, stride)(x).

    x: NCHW float array.  Returns NCHW pooled output (ceil_mode=False,
    count_include_pad=True, matching the PyTorch defaults).
    """
    assert type in ("max", "avg")
    kH, kW = _pair(kernel_size)
    sH, sW = _pair(stride)
    pH, pW = _pair(padding)
    assert 2 * pH <= kH and 2 * pW <= kW, "padding must be <= kernel_size / 2"

    N, C, H, W = x.shape
    Ho = (H + 2 * pH - kH) // sH + 1
    Wo = (W + 2 * pW - kW) // sW + 1
    NC = N * C
    NC_pad = max(128, _round_up(NC, 128))        # lane-dense output stores

    bytes_in = x.dtype.itemsize
    bytes_out = bytes_in
    # max is exact in the native dtype (bf16-safe); avg accumulates in f32.
    acc_dtype = x.dtype if type == "max" else jnp.float32

    h_blocked = kH <= sH                         # halo-free Blocked H tiling
    Hp = H + 2 * pH
    Wp = W + 2 * pW
    NC_TILE, Ho_T, fp = _choose_tiles(
        NC_pad, Ho, Hp, Wp, Wo, sH, bytes_in, bytes_out, h_blocked)
    n_ho = Ho // Ho_T
    if h_blocked:
        Hp = max(Hp, n_ho * Ho_T * sH)           # H block size divides exactly

    pad_val = 0.0 if type == "avg" else float("-inf")

    # One layout pass NCHW -> (Hp, Wp, NC_pad); fused into the pallas operand
    # when possible (allow_input_fusion).
    x_hwnc = jnp.transpose(x, (2, 3, 0, 1)).reshape(H, W, NC)
    x_hwnc = jnp.pad(
        x_hwnc,
        ((pH, Hp - H - pH), (pW, pW), (0, NC_pad - NC)),
        constant_values=pad_val)

    in_rows = Ho_T * sH if h_blocked else Hp
    if h_blocked:
        in_index_map = lambda c, h: (h, 0, c)
    else:
        # Full-H slab: constant block index across the (inner) ho axis keeps it
        # resident in VMEM, no re-DMA per step.
        in_index_map = lambda c, h: (0, 0, c)

    kernel = functools.partial(
        _pool_kernel, pool_type=type, kH=kH, kW=kW, sH=sH, sW=sW,
        Ho_T=Ho_T, Wo=Wo, h_blocked=h_blocked, acc_dtype=acc_dtype,
        inv_area=1.0 / float(kH * kW))

    vmem_limit = int(max(32 * 1024 * 1024,
                         min(48 * 1024 * 1024, 2.5 * fp + (4 << 20))))

    out = pl.pallas_call(
        kernel,
        out_shape=jax.ShapeDtypeStruct((Ho, Wo, NC_pad), x.dtype),
        grid=(NC_pad // NC_TILE, n_ho),
        in_specs=[pl.BlockSpec((in_rows, Wp, NC_TILE), in_index_map)],
        out_specs=pl.BlockSpec((Ho_T, Wo, NC_TILE), lambda c, h: (h, 0, c)),
        compiler_params=pltpu.CompilerParams(
            dimension_semantics=("parallel", "parallel"),
            vmem_limit_bytes=vmem_limit,
            allow_input_fusion=[True]),
    )(x_hwnc)

    out = out[:, :, :NC].reshape(Ho, Wo, N, C)
    return jnp.transpose(out, (2, 3, 0, 1))


def _reference_pool(x, *, type, kernel_size, padding, stride):
    kH, kW = _pair(kernel_size)
    sH, sW = _pair(stride)
    pH, pW = _pair(padding)
    dims = (1, 1, kH, kW)
    strides = (1, 1, sH, sW)
    pads = [(0, 0), (0, 0), (pH, pH), (pW, pW)]
    if type == "max":
        return lax.reduce_window(x, -jnp.inf, lax.max, dims, strides, pads)
    s = lax.reduce_window(x, 0.0, lax.add, dims, strides, pads)
    return s / float(kH * kW)


if __name__ == "__main__":
    key = jax.random.PRNGKey(0)
    x = jax.random.normal(key, (2, 4, 16, 16), dtype=jnp.float32)

    configs = [
        dict(kernel_size=3, padding=1, stride=2),   # padded, strided, overlapping
        dict(kernel_size=2, padding=0, stride=2),   # classic 2x2/2 (halo-free path)
        dict(kernel_size=3, padding=1, stride=1),   # unit stride, padded
    ]

    for cfg in configs:
        for ptype in ("max", "avg"):
            out = pool2d(x, type=ptype, **cfg)
            out = jax.block_until_ready(out)
            ref = _reference_pool(x, type=ptype, **cfg)
            assert out.shape == ref.shape, (out.shape, ref.shape, cfg, ptype)
            assert jnp.allclose(out, ref, atol=1e-5, rtol=1e-5), (cfg, ptype)

    print("KERNEL_OK")
</pallas_src>

<mosaic_0001>
module attributes {stable_mosaic.version = 11 : i64} {
  func.func @_pool_kernel(%arg0: i32, %arg1: i32, %arg2: memref<18x18x128xf32, #tpu.memory_space<vmem>>, %arg3: memref<4x8x128xf32, #tpu.memory_space<vmem>>) attributes {dimension_semantics = [#tpu.dimension_semantics<parallel>, #tpu.dimension_semantics<parallel>], iteration_bounds = array<i64: 1, 2>, scalar_prefetch = 0 : i64, scratch_operands = 0 : i64, tpu.core_type = #tpu.core_type<tc>, window_params = [{transform_indices = @transform_0, window_bounds = array<i64: 18, 18, 128>}, {transform_indices = @transform_1, window_bounds = array<i64: 4, 8, 128>}]} {
    %c8_i32 = arith.constant 8 : i32
    %0 = arith.muli %arg1, %c8_i32 : i32
    %1 = tpu.assume_multiple %0, 8 : i32
    %c0_i32 = arith.constant 0 : i32
    %2 = arith.addi %1, %c0_i32 : i32
    %3 = arith.index_cast %2 : i32 to index
    %c0 = arith.constant 0 : index
    %c0_0 = arith.constant 0 : index
    %4 = tpu.strided_load %arg2[%3, %c0, %c0_0] {strides = array<i32: 2, 2, 1>} : memref<18x18x128xf32, #tpu.memory_space<vmem>>, vector<4x8x128xf32>
    %c0_i32_1 = arith.constant 0 : i32
    %5 = arith.addi %1, %c0_i32_1 : i32
    %6 = arith.index_cast %5 : i32 to index
    %c1 = arith.constant 1 : index
    %c0_2 = arith.constant 0 : index
    %7 = tpu.strided_load %arg2[%6, %c1, %c0_2] {strides = array<i32: 2, 2, 1>} : memref<18x18x128xf32, #tpu.memory_space<vmem>>, vector<4x8x128xf32>
    %8 = arith.maximumf %4, %7 : vector<4x8x128xf32>
    %c0_i32_3 = arith.constant 0 : i32
    %9 = arith.addi %1, %c0_i32_3 : i32
    %10 = arith.index_cast %9 : i32 to index
    %c2 = arith.constant 2 : index
    %c0_4 = arith.constant 0 : index
    %11 = tpu.strided_load %arg2[%10, %c2, %c0_4] {strides = array<i32: 2, 2, 1>} : memref<18x18x128xf32, #tpu.memory_space<vmem>>, vector<4x8x128xf32>
    %12 = arith.maximumf %8, %11 : vector<4x8x128xf32>
    %c1_i32 = arith.constant 1 : i32
    %13 = arith.addi %1, %c1_i32 : i32
    %14 = arith.index_cast %13 : i32 to index
    %c0_5 = arith.constant 0 : index
    %c0_6 = arith.constant 0 : index
    %15 = tpu.strided_load %arg2[%14, %c0_5, %c0_6] {strides = array<i32: 2, 2, 1>} : memref<18x18x128xf32, #tpu.memory_space<vmem>>, vector<4x8x128xf32>
    %16 = arith.maximumf %12, %15 : vector<4x8x128xf32>
    %c1_i32_7 = arith.constant 1 : i32
    %17 = arith.addi %1, %c1_i32_7 : i32
    %18 = arith.index_cast %17 : i32 to index
    %c1_8 = arith.constant 1 : index
    %c0_9 = arith.constant 0 : index
    %19 = tpu.strided_load %arg2[%18, %c1_8, %c0_9] {strides = array<i32: 2, 2, 1>} : memref<18x18x128xf32, #tpu.memory_space<vmem>>, vector<4x8x128xf32>
    %20 = arith.maximumf %16, %19 : vector<4x8x128xf32>
    %c1_i32_10 = arith.constant 1 : i32
    %21 = arith.addi %1, %c1_i32_10 : i32
    %22 = arith.index_cast %21 : i32 to index
    %c2_11 = arith.constant 2 : index
    %c0_12 = arith.constant 0 : index
    %23 = tpu.strided_load %arg2[%22, %c2_11, %c0_12] {strides = array<i32: 2, 2, 1>} : memref<18x18x128xf32, #tpu.memory_space<vmem>>, vector<4x8x128xf32>
    %24 = arith.maximumf %20, %23 : vector<4x8x128xf32>
    %c2_i32 = arith.constant 2 : i32
    %25 = arith.addi %1, %c2_i32 : i32
    %26 = arith.index_cast %25 : i32 to index
    %c0_13 = arith.constant 0 : index
    %c0_14 = arith.constant 0 : index
    %27 = tpu.strided_load %arg2[%26, %c0_13, %c0_14] {strides = array<i32: 2, 2, 1>} : memref<18x18x128xf32, #tpu.memory_space<vmem>>, vector<4x8x128xf32>
    %28 = arith.maximumf %24, %27 : vector<4x8x128xf32>
    %c2_i32_15 = arith.constant 2 : i32
    %29 = arith.addi %1, %c2_i32_15 : i32
    %30 = arith.index_cast %29 : i32 to index
    %c1_16 = arith.constant 1 : index
    %c0_17 = arith.constant 0 : index
    %31 = tpu.strided_load %arg2[%30, %c1_16, %c0_17] {strides = array<i32: 2, 2, 1>} : memref<18x18x128xf32, #tpu.memory_space<vmem>>, vector<4x8x128xf32>
    %32 = arith.maximumf %28, %31 : vector<4x8x128xf32>
    %c2_i32_18 = arith.constant 2 : i32
    %33 = arith.addi %1, %c2_i32_18 : i32
    %34 = arith.index_cast %33 : i32 to index
    %c2_19 = arith.constant 2 : index
    %c0_20 = arith.constant 0 : index
    %35 = tpu.strided_load %arg2[%34, %c2_19, %c0_20] {strides = array<i32: 2, 2, 1>} : memref<18x18x128xf32, #tpu.memory_space<vmem>>, vector<4x8x128xf32>
    %36 = arith.maximumf %32, %35 : vector<4x8x128xf32>
    %c0_21 = arith.constant 0 : index
    %c0_22 = arith.constant 0 : index
    %c0_23 = arith.constant 0 : index
    %37 = vector.load %arg3[%c0_21, %c0_22, %c0_23] : memref<4x8x128xf32, #tpu.memory_space<vmem>>, vector<4x8x128xf32>
    tpu.vector_store %arg3[%c0_21, %c0_22, %c0_23], %36 {strides = array<i32>} : memref<4x8x128xf32, #tpu.memory_space<vmem>>, vector<4x8x128xf32>,
    return
  }
  func.func @transform_0(%arg0: i32, %arg1: i32) -> (i32, i32, i32) {
    %c0_i32 = arith.constant 0 : i32
    %c0_i32_0 = arith.constant 0 : i32
    %c0_i32_1 = arith.constant 0 : i32
    return %c0_i32, %c0_i32_0, %arg0 : i32, i32, i32
  }
  func.func @transform_1(%arg0: i32, %arg1: i32) -> (i32, i32, i32) {
    %c0_i32 = arith.constant 0 : i32
    %c0_i32_0 = arith.constant 0 : i32
    return %arg1, %c0_i32, %arg0 : i32, i32, i32
  }
}

</mosaic_0001>

<bundles_post_ra>
// kernel: tpu_custom_call.1
= control target key start
LH: loop header
LB: loop body
LE: loop exit
PB: predicated region body
PF: predicated region fallthrough
CT: control target
= control target key end

     0   :  { %6 = vsyncpa [#allocation3], 0  ;;  %s810_s0 = inlined_call_operand.hbm [shape: f32[18,18,128], index: 0, kind: input, shape index: {}]   ;;  %s811_s1 = inlined_call_operand.hbm [shape: f32[8,8,128], index: 1, kind: output, shape index: {}]  }
   0x1   :  { %7 = vsyncpa [#allocation4], 0 }
   0x2   :  { %9 = vsyncpa [#allocation4 + $0x1], 0  ;;  %s619_s6 = smov 0   ;;  %s621_s7 = smov 0  }
   0x3   :  { %s623_s8 = smov 0   ;;  %s625_s9 = smov 0  }
   0x4   :  { %s627_s10 = smov 0   ;;  %s629_s11 = smov 0  }
   0x5 LB: > { %s367_s12 = sadd.s32 4294967295, %s601_s11   ;;  %s368_s13 = sadd.s32 4294967294, %s601_s11   ;;  %s601_s11 = sphi %s629_s11, %s15_s11   ;;  %s597_s10 = sphi %s627_s10, %s829_s10   ;;  %s593_s9 = sphi %s625_s9, %s828_s9   ;;  %s589_s8 = sphi %s623_s8, %s827_s8   ;;  %s585_s7 = sphi %s621_s7, %s826_s7   ;;  %s581_s6 = sphi %s619_s6, %s825_s6  }
   0x6   : > { %s24_s14 = sadd.s32 1, %s597_s10  ;;  %s62_s15 = sadd.s32 1, %s589_s8 }
   0x7   : > { %p25_p0 = scmp.ge.s32.totalorder %s24_s14, 2  ;;  %p72_p1 = scmp.ne.s32.totalorder %s589_s8, %s585_s7 }
   0x8   : > { %p73_p2 = scmp.eq.s32.totalorder %s367_s12, 1  ;;  %p78_p3 = scmp.ne.s32.totalorder %s585_s7, %s581_s6 }
   0x9   : > { %s831_s14 = smov (%p25_p0, %s24_s14), 0  ;;  %p79_p5 = scmp.eq.s32.totalorder %s368_s13, 1 }
   0xa   : > { %p659_p4 = por %p73_p2, %p72_p1  ;;  %s57_s17 = ssub.s32 %s597_s10, %s831_s14 }
   0xb   : > { %p369_p6 = scmp.ge.s32.totalorder %s601_s11, 1  ;;  %p60_p7 = scmp.eq.s32.totalorder %s57_s17, 0 }
   0xc   : > { %s816_s16 = scalar_select %p659_p4, 1, 0 }
   0xd   : > { %p666_p8 = por %p79_p5, %p78_p3  ;;  %p86_p9 = scmp.lt.s32.totalorder %s601_s11, 3 }
   0xe   : > { %s672_s19 = scalar_select %p60_p7, %s589_s8, %s62_s15  }
   0xf   : > { %s817_s18 = scalar_select %p666_p8, 1, 0 }
  0x10   : > { %p674_p10 = pnand %p369_p6, %p86_p9  ;;  %p678_p11 = scmp.eq.s32.totalorder %s367_s12, 0 }
  0x11   : > { %s603_s22 = smov [#allocation2]   ;;  %s491_s27 = scalar_lea.hbm %s810_s0, 6912 }
  0x12   : > { %s818_s20 = scalar_select %p674_p10, 1, 0 }
  0x13   : > { %s819_s21 = scalar_select %p678_p11, 1, 0 }
  0x14   : > { %p427_p12 = pneg %p674_p10  ;;  %s100_s23 = sshll.u32 %s603_s22, 4  ;;  %s101_s23 = int_to_ptr.vmem [resolvable:$true] %s100_s23 }
  0x15   : > { %p492_p0 = scmp.ne.s32.totalorder %s810_s0, %s491_s27  ;;  %p498_p5 = scmp.lt.u32.totalorder %s491_s27, %s810_s0 }
  0x16   : > { %p686_p13 = pnand %p678_p11, %p427_p12 }
  0x18   : > { %p493_p1 = pneg %p686_p13 }
  0x1a   : > { %p494_p2 = pnand %p493_p1, %p492_p0 }
  0x1c   : > { %p495_p3 = pneg %p494_p2 }
  0x1e   : > { %p500_p6 = pnand %p498_p5, %p495_p3 }
  0x20   : > { %503 = shalt.err (!%p500_p6)
}
  0x21   : > { %s504_s3 = scalar_lea.vmem %s101_s23, 6912  ;;  %p512_p8 = scmp.lt.s32.totalorder %s101_s23, %s101_s23 }
  0x22   : > { %p505_p7 = scmp.ne.s32.totalorder %s101_s23, %s504_s3  ;;  %p513_p4 = scmp.lt.s32.totalorder %s504_s3, %s504_s3 }
  0x24   : > { %p507_p9 = pnand %p505_p7, %p493_p1  ;;  %p514_p11 = por %p513_p4, %p512_p8 }
  0x26   : > { %p508_p12 = pneg %p507_p9 }
  0x28   : > { %p515_p10 = pnand %p514_p11, %p508_p12 }
  0x2a   : > { %518 = shalt.err (!%p515_p10)
}
  0x2b   : > { %s604_s4 = smov 128   ;;  %s605_s5 = smov 8  }
  0x2c   : > { %430 = dma.hbm_to_vmem [thread:$0]  (!%p686_p13), %s810_s0, 6912, %s101_s23, [#allocation3], %s604_s4, %s604_s4, %s605_s5  }
  0x2d   : > { %p821_p0 = scmp.ne.s32.totalorder %s818_s20, 0 }
  0x2e   : > { %p822_p2 = scmp.ne.s32.totalorder (!%p821_p0), %s819_s21, 0 }
  0x2f   : > { %116 = sbr.rel (%p821_p0) target bundleno = 97 (0x61), region = 24 }
  0x36   : > { %572 = dma.done.wait (%p822_p2), [#allocation3], 6912  }
  0x37   : > { %574 = vsyncadd (%p822_p2), [#allocation3], 4294960384  ;;  %s375_s15 = smul.u32 192, %s593_s9  ;;  %s128_s20 = sand.u32 1, %s585_s7  }
  0x38   : > { %s373_s21 = sshll.u32 %s128_s20, 5  ;;  %s420_s24 = sshll.u32 %s593_s9, 9 }
  0x39   : > { %s713_s17 = scalar_lea.vmem [#allocation2], %s375_s15  ;;  %s130_s22 = scalar_lea.vmem [#allocation5], %s373_s21 }
  0x3a   : > { %v135_v0 = vld [vmem:[%s713_s17] ss:$2 sm:$0xff]  ;;  %v379_v1 = vld [vmem:[%s713_s17 + $0x1] ss:$2 sm:$0xff]  ;;  %v376_v6 = vld [vmem:[%s713_s17 + $0x30] ss:$2 sm:$0xff]  ;;  %s760_s27 = scalar_lea.hbm %s811_s1, %s420_s24 }
  0x3b   : > { %v383_v2 = vld [vmem:[%s713_s17 + $0x2] ss:$2 sm:$0xff]  ;;  %v150_v3 = vmax.f32 %v135_v0, %v379_v1  ;;  %v380_v7 = vld [vmem:[%s713_s17 + $0x31] ss:$2 sm:$0xff]  ;;  %v384_v8 = vld [vmem:[%s713_s17 + $0x32] ss:$2 sm:$0xff] }
  0x3c   : > { %v389_v4 = vld [vmem:[%s713_s17 + $0x18] ss:$2 sm:$0xff]  ;;  %v393_v9 = vld [vmem:[%s713_s17 + $0x19] ss:$2 sm:$0xff]  ;;  %v151_v10 = vmax.f32 %v376_v6, %v380_v7  ;;  %v390_v13 = vld [vmem:[%s713_s17 + $0x48] ss:$2 sm:$0xff] }
  0x3d   : > { %v162_v5 = vmax.f32 %v150_v3, %v383_v2  ;;  %v397_v12 = vld [vmem:[%s713_s17 + $0x1a] ss:$2 sm:$0xff]  ;;  %v381_v16 = vld [vmem:[%s713_s17 + $0x61] ss:$2 sm:$0xff]  ;;  %v398_v23 = vld [vmem:[%s713_s17 + $0x4a] ss:$2 sm:$0xff] }
  0x3e   : > { %v163_v14 = vmax.f32 %v151_v10, %v384_v8  ;;  %v377_v15 = vld [vmem:[%s713_s17 + $0x60] ss:$2 sm:$0xff]  ;;  %v394_v19 = vld [vmem:[%s713_s17 + $0x49] ss:$2 sm:$0xff]  ;;  %v403_v21 = vld [vmem:[%s713_s17 + $0x30] ss:$2 sm:$0xff] }
  0x3f   : > { %v176_v11 = vmax.f32 %v162_v5, %v389_v4  ;;  %v385_v17 = vld [vmem:[%s713_s17 + $0x62] ss:$2 sm:$0xff]  ;;  %v152_v20 = vmax.f32 %v377_v15, %v381_v16  ;;  %v382_v28 = vld [vmem:[%s713_s17 + $0x91] ss:$2 sm:$0xff]  ;;  %v386_v29 = vld [vmem:[%s713_s17 + $0x92] ss:$2 sm:$0xff] }
  0x40   : > { %v177_v22 = vmax.f32 %v163_v14, %v390_v13  ;;  %v391_v24 = vld [vmem:[%s713_s17 + $0x78] ss:$2 sm:$0xff]  ;;  %v407_v30 = vld [vmem:[%s713_s17 + $0x31] ss:$2 sm:$0xff]  ;;  %v392_v37 = vld [vmem:[%s713_s17 + $0xa8] ss:$2 sm:$0xff] }
  0x41   : > { %v188_v18 = vmax.f32 %v176_v11, %v393_v9  ;;  %v164_v26 = vmax.f32 %v152_v20, %v385_v17  ;;  %v378_v27 = vld [vmem:[%s713_s17 + $0x90] ss:$2 sm:$0xff]  ;;  %v395_v32 = vld [vmem:[%s713_s17 + $0x79] ss:$2 sm:$0xff]  ;;  %v404_v35 = vld [vmem:[%s713_s17 + $0x60] ss:$2 sm:$0xff] }
  0x42   : > { %v189_v31 = vmax.f32 %v177_v22, %v394_v19  ;;  %v153_v33 = vmax.f32 %v378_v27, %v382_v28  ;;  %v411_v38 = vld [vmem:[%s713_s17 + $0x32] ss:$2 sm:$0xff]  ;;  %v408_v43 = vld [vmem:[%s713_s17 + $0x61] ss:$2 sm:$0xff]  ;;  %v412_v50 = vld [vmem:[%s713_s17 + $0x62] ss:$2 sm:$0xff] }
  0x43   : > { %v200_v25 = vmax.f32 %v188_v18, %v397_v12  ;;  %v178_v36 = vmax.f32 %v164_v26, %v391_v24  ;;  %v399_v40 = vld [vmem:[%s713_s17 + $0x7a] ss:$2 sm:$0xff]  ;;  %v396_v45 = vld [vmem:[%s713_s17 + $0xa9] ss:$2 sm:$0xff]  ;;  %v400_v52 = vld [vmem:[%s713_s17 + $0xaa] ss:$2 sm:$0xff] }
  0x44   : > { %v201_v39 = vmax.f32 %v189_v31, %v398_v23  ;;  %v165_v41 = vmax.f32 %v153_v33, %v386_v29  ;;  %v405_v47 = vld [vmem:[%s713_s17 + $0x90] ss:$2 sm:$0xff]  ;;  %v409_v54 = vld [vmem:[%s713_s17 + $0x91] ss:$2 sm:$0xff]  ;;  %v406_v57 = vld [vmem:[%s713_s17 + $0xc0] ss:$2 sm:$0xff] }
  0x45   : > { %v214_v34 = vmax.f32 %v200_v25, %v403_v21  ;;  %v190_v44 = vmax.f32 %v178_v36, %v395_v32  ;;  %v413_v59 = vld [vmem:[%s713_s17 + $0x92] ss:$2 sm:$0xff]  ;;  %v410_v62 = vld [vmem:[%s713_s17 + $0xc1] ss:$2 sm:$0xff]  ;;  %s261_s23 = sshll.u32 %s130_s22, 4  ;;  %s764_s28 = scalar_lea.sflag [#allocation4], %s128_s20  ;;  %s755_s23 = int_to_ptr.vmem [resolvable:$true] %s261_s23 }
  0x46   : > { %v215_v46 = vmax.f32 %v201_v39, %v404_v35  ;;  %v179_v48 = vmax.f32 %v165_v41, %v392_v37  ;;  %v414_v1 = vld [vmem:[%s713_s17 + $0xc2] ss:$2 sm:$0xff]  ;;  %s519_s9 = scalar_lea.vmem %s755_s23, 512  ;;  %p823_p8 = scmp.ne.s32.totalorder %s816_s16, 0 }
  0x47   : > { %v226_v42 = vmax.f32 %v214_v34, %v407_v30  ;;  %v202_v51 = vmax.f32 %v190_v44, %v399_v40  ;;  %p520_p4 = scmp.ne.s32.totalorder %s755_s23, %s519_s9  ;;  %s606_s29 = smov [#allocation5]  }
  0x48   : > { %v227_v53 = vmax.f32 %v215_v46, %v408_v43  ;;  %v191_v55 = vmax.f32 %v179_v48, %v396_v45  ;;  %s523_s30 = sshll.u32 %s606_s29, 4  ;;  %s524_s30 = int_to_ptr.vmem [resolvable:$false] %s523_s30 }
  0x49   : > { %v238_v49 = vmax.f32 %v226_v42, %v411_v38  ;;  %v216_v56 = vmax.f32 %v202_v51, %v405_v47  ;;  %p521_p10 = pnand %p520_p4, %p823_p8  ;;  %s525_s2 = scalar_lea.vmem %s524_s30, 1024 }
  0x4a   : > { %v239_v58 = vmax.f32 %v227_v53, %v412_v50  ;;  %v203_v60 = vmax.f32 %v191_v55, %v400_v52  ;;  %p526_p13 = scmp.lt.s32.totalorder %s755_s23, %s524_s30  ;;  %p527_p1 = scmp.lt.s32.totalorder %s525_s2, %s519_s9 }
  0x4b   : > { %242 = vst [vmem:[%s130_s22] sm:$0xff] %v238_v49  ;;  %v228_v61 = vmax.f32 %v216_v56, %v409_v54  ;;  %p522_p11 = pneg %p521_p10 }
  0x4c   : > { %243 = vst [vmem:[%s130_s22 + $0x8] sm:$0xff] %v239_v58  ;;  %v217_v63 = vmax.f32 %v203_v60, %v406_v57  ;;  %p528_p3 = por %p527_p1, %p526_p13 }
  0x4d   : > { %v240_v0 = vmax.f32 %v228_v61, %v413_v59 }
  0x4e   : > { %v229_v2 = vmax.f32 %v217_v63, %v410_v62  ;;  %p529_p5 = pnand %p528_p3, %p522_p11 }
  0x4f   : > { %244 = vst [vmem:[%s130_s22 + $0x10] sm:$0xff] %v240_v0 }
  0x50   : > { %v241_v3 = vmax.f32 %v229_v2, %v414_v1 }
  0x52   : > { %245 = vst [vmem:[%s130_s22 + $0x18] sm:$0xff] %v241_v3 }
  0x53   : > { %532 = shalt.err (!%p529_p5)
}
  0x54   : > { %s533_s3 = scalar_lea.hbm %s760_s27, 512  ;;  %s537_s12 = scalar_lea.hbm %s811_s1, 1024 }
  0x55   : > { %p534_p6 = scmp.ne.s32.totalorder %s760_s27, %s533_s3  ;;  %p538_p12 = scmp.lt.u32.totalorder %s760_s27, %s811_s1 }
  0x56   : > { %p539_p0 = scmp.lt.u32.totalorder %s537_s12, %s533_s3  ;;  %p541_p4 = scmp.lt.u32.totalorder %s533_s3, %s760_s27 }
  0x57   : > { %p535_p7 = pnand %p534_p6, %p823_p8 }
  0x58   : > { %p540_p2 = por %p539_p0, %p538_p12 }
  0x59   : > { %p536_p9 = pneg %p535_p7 }
  0x5a   : > { %p542_p10 = por %p541_p4, %p540_p2 }
  0x5c   : > { %p543_p11 = pnand %p542_p10, %p536_p9 }
  0x5e   : > { %546 = shalt.err (!%p543_p11)
}
  0x5f   : > { %s607_s17 = smov 128   ;;  %s608_s20 = smov 8  }
  0x60   : > { %425 = dma.vmem_to_hbm [thread:$0]  (%p823_p8), %s755_s23, 512, %s760_s27, %s764_s28, %s607_s17, %s607_s17, %s608_s20  }
  0x61 PF: > { %p437_p13 = scmp.ge.s32.totalorder %s601_s11, 2  ;;  %s276_s21 = sand.u32 1, %s581_s6  }
  0x62   : > { %p824_p1 = scmp.ne.s32.totalorder %s817_s18, 0  ;;  %s277_s22 = scalar_lea.sflag [#allocation4], %s276_s21 }
  0x64   : > { %p432_p3 = pnand %p437_p13, %p824_p1 }
  0x66   : > { %576 = dma.done.wait (!%p432_p3), %s277_s22, 512  }
  0x67   : > { %578 = vsyncadd (!%p432_p3), %s277_s22, 4294966784  ;;  %s15_s11 = sadd.s32 1, %s601_s11   ;;  %s825_s6 = smov %s585_s7 }
  0x68   : > { %p12_p5 = scmp.ge.s32.totalorder %s15_s11, 4   ;;  %s826_s7 = smov %s589_s8 }
  0x69   : > { %s827_s8 = smov %s672_s19  ;;  %s828_s9 = smov %s597_s10 }
  0x6a   : > { %s829_s10 = smov %s831_s14  ;;  %14 = sbr.rel (!%p12_p5) target bundleno = 5 (0x5), region = 98 }
  0x71   :  { %282 = vsyncpa [#allocation3], 1 }
  0x72   :  { %284 = vsyncpa [#allocation3 + $0x1], 1 }
  0x73   :  { %285 = vsyncpa [#allocation4], 1 }
  0x74   :  { %287 = vsyncpa [#allocation4 + $0x1], 1 }

</bundles_post_ra>
